<compile_context>
chip_gen: v6e
topology: v6e:2x2x1
jax: 0.10.0
libtpu: 0.0.40
codegen_flags: <defaults>
</compile_context>

<pallas_src>
import functools

import jax
import jax.numpy as jnp
from jax.experimental import pallas as pl
from jax.experimental.pallas import tpu as pltpu


# ---------------------------------------------------------------------------
# Kernel
# ---------------------------------------------------------------------------
def _actor_kernel(
    x_ref,
    w1_ref, b1_ref, w2_ref, b2_ref, w3_ref, b3_ref, wo_ref, bo_ref,
    out_ref,
    *, max_action,
):
    def linear(h, w_ref, b_ref):
        # bf16 x bf16 -> f32 accumulation on the MXU; bias add in f32.
        return jnp.dot(
            h.astype(w_ref.dtype), w_ref[...], preferred_element_type=jnp.float32
        ) + b_ref[...]

    h = jnp.maximum(linear(x_ref[...], w1_ref, b1_ref), 0.0)
    h = jnp.maximum(linear(h, w2_ref, b2_ref), 0.0)
    h = jnp.maximum(linear(h, w3_ref, b3_ref), 0.0)
    out_ref[...] = (max_action * jnp.tanh(linear(h, wo_ref, bo_ref))).astype(
        out_ref.dtype
    )


# ---------------------------------------------------------------------------
# Wrapper
# ---------------------------------------------------------------------------
def actor_forward(x, params, max_action, *, tile_b=512):
    """x: (B, obs+goal) f32.  params: [(W, b)] * 4, W: (in, out) bf16, b: (1, out) f32.

    Returns actions: (B, action) f32 in [-max_action, max_action].
    """
    x = x.astype(jnp.float32)
    B, in_dim = x.shape
    act_dim = params[-1][0].shape[1]
    flat_params = [p for pair in params for p in pair]  # W1,b1,W2,b2,W3,b3,Wo,bo

    # Batch tiling: whole batch in one tile when small, otherwise 512-row tiles
    # (pad batch up to a multiple of the tile, slice the padding off at the end).
    if B <= tile_b:
        tb, pad = B, 0
    else:
        tb = tile_b
        pad = (-B) % tb
        if pad:
            x = jnp.pad(x, ((0, pad), (0, 0)))
    padded_b = B + pad
    grid = (padded_b // tb,)

    # Weights/biases: whole-array resident in VMEM (DMA'd once, not per tile).
    resident = pl.BlockSpec(memory_space=pltpu.MemorySpace.VMEM)

    kernel = functools.partial(_actor_kernel, max_action=float(max_action))
    out = pl.pallas_call(
        kernel,
        out_shape=jax.ShapeDtypeStruct((padded_b, act_dim), jnp.float32),
        grid=grid,
        in_specs=[pl.BlockSpec((tb, in_dim), lambda i: (i, 0))]
        + [resident] * len(flat_params),
        out_specs=pl.BlockSpec((tb, act_dim), lambda i: (i, 0)),
        compiler_params=pltpu.CompilerParams(
            dimension_semantics=("parallel",)  # batch tiles -> both TCs on v7x
        ),
    )(x, *flat_params)
    return out[:B]


# ---------------------------------------------------------------------------
# Parameter init (matches torch xavier_uniform_(gain=1) + constant_(bias, 0))
# ---------------------------------------------------------------------------
def init_actor_params(key, in_dim, act_dim, hidden=256, weight_dtype=jnp.bfloat16):
    """Returns [(W, b)] * 4 with W: (in, out) weight_dtype, b: (1, out) f32."""
    dims = [(in_dim, hidden), (hidden, hidden), (hidden, hidden), (hidden, act_dim)]
    keys = jax.random.split(key, len(dims))
    params = []
    for k, (fi, fo) in zip(keys, dims):
        # xavier_uniform_ is symmetric in fan_in/fan_out, so (in, out) layout is fine.
        limit = float(jnp.sqrt(6.0 / (fi + fo)))
        w = jax.random.uniform(
            k, (fi, fo), dtype=jnp.float32, minval=-limit, maxval=limit
        ).astype(weight_dtype)
        b = jnp.zeros((1, fo), dtype=jnp.float32)
        params.append((w, b))
    return params


# ---------------------------------------------------------------------------
# Pure-JAX reference (same dtype handling as the kernel)
# ---------------------------------------------------------------------------
def _reference_forward(x, params, max_action):
    (w1, b1), (w2, b2), (w3, b3), (wo, bo) = params

    def lin(h, w, b):
        return jnp.dot(h.astype(w.dtype), w, preferred_element_type=jnp.float32) + b

    h = x.astype(jnp.float32)
    h = jnp.maximum(lin(h, w1, b1), 0.0)
    h = jnp.maximum(lin(h, w2, b2), 0.0)
    h = jnp.maximum(lin(h, w3, b3), 0.0)
    return max_action * jnp.tanh(lin(h, wo, bo))


if __name__ == "__main__":
    # env_params: obs=10, goal=3, action=4, action_max=1.0  (small synthetic sizes)
    obs_dim, goal_dim, act_dim = 10, 3, 4
    max_action = 1.0
    batch = 8
    in_dim = obs_dim + goal_dim

    key = jax.random.PRNGKey(0)
    k_params, k_x = jax.random.split(key, 2)

    params = init_actor_params(k_params, in_dim, act_dim)
    x = jax.random.normal(k_x, (batch, in_dim), dtype=jnp.float32)

    fwd = jax.jit(functools.partial(actor_forward, max_action=max_action))
    actions = fwd(x, params)
    jax.block_until_ready(actions)

    actions_ref = _reference_forward(x, params, max_action)
    assert actions.shape == (batch, act_dim)
    assert bool(jnp.all(jnp.abs(actions) <= max_action + 1e-6))
    assert jnp.allclose(actions, actions_ref, atol=2e-3, rtol=2e-3)

    print("KERNEL_OK")
</pallas_src>

<mosaic_0001>
module attributes {stable_mosaic.version = 11 : i64} {
  func.func @_actor_kernel(%arg0: i32, %arg1: memref<8x13xf32, #tpu.memory_space<vmem>>, %arg2: memref<13x256xbf16, #tpu.memory_space<vmem>>, %arg3: memref<1x256xf32, #tpu.memory_space<vmem>>, %arg4: memref<256x256xbf16, #tpu.memory_space<vmem>>, %arg5: memref<1x256xf32, #tpu.memory_space<vmem>>, %arg6: memref<256x256xbf16, #tpu.memory_space<vmem>>, %arg7: memref<1x256xf32, #tpu.memory_space<vmem>>, %arg8: memref<256x4xbf16, #tpu.memory_space<vmem>>, %arg9: memref<1x4xf32, #tpu.memory_space<vmem>>, %arg10: memref<8x4xf32, #tpu.memory_space<vmem>>) attributes {dimension_semantics = [#tpu.dimension_semantics<parallel>], iteration_bounds = array<i64: 1>, scalar_prefetch = 0 : i64, scratch_operands = 0 : i64, tpu.core_type = #tpu.core_type<tc>, window_params = [{transform_indices = @transform_0, window_bounds = array<i64: 8, 13>}, {pipeline_mode = #tpu.pipeline_mode<synchronous>, transform_indices = @transform_1, window_bounds = array<i64: 13, 256>}, {pipeline_mode = #tpu.pipeline_mode<synchronous>, transform_indices = @transform_2, window_bounds = array<i64: 1, 256>}, {pipeline_mode = #tpu.pipeline_mode<synchronous>, transform_indices = @transform_3, window_bounds = array<i64: 256, 256>}, {pipeline_mode = #tpu.pipeline_mode<synchronous>, transform_indices = @transform_4, window_bounds = array<i64: 1, 256>}, {pipeline_mode = #tpu.pipeline_mode<synchronous>, transform_indices = @transform_5, window_bounds = array<i64: 256, 256>}, {pipeline_mode = #tpu.pipeline_mode<synchronous>, transform_indices = @transform_6, window_bounds = array<i64: 1, 256>}, {pipeline_mode = #tpu.pipeline_mode<synchronous>, transform_indices = @transform_7, window_bounds = array<i64: 256, 4>}, {pipeline_mode = #tpu.pipeline_mode<synchronous>, transform_indices = @transform_8, window_bounds = array<i64: 1, 4>}, {transform_indices = @transform_9, window_bounds = array<i64: 8, 4>}]} {
    %c0 = arith.constant 0 : index
    %c0_0 = arith.constant 0 : index
    %0 = vector.load %arg1[%c0, %c0_0] : memref<8x13xf32, #tpu.memory_space<vmem>>, vector<8x13xf32>
    %1 = arith.truncf %0 : vector<8x13xf32> to vector<8x13xbf16>
    %c0_1 = arith.constant 0 : index
    %c0_2 = arith.constant 0 : index
    %2 = vector.load %arg2[%c0_1, %c0_2] : memref<13x256xbf16, #tpu.memory_space<vmem>>, vector<13x256xbf16>
    %cst = arith.constant dense<0.000000e+00> : vector<8x256xf32>
    %3 = tpu.matmul %1, %2, %cst {dimension_numbers = #tpu.dot_dimension_numbers<[1], [0], [0], [1], [0, 0, 1, 1], [], []>} : vector<8x13xbf16>, vector<13x256xbf16>, vector<8x256xf32> -> vector<8x256xf32>
    %c0_3 = arith.constant 0 : index
    %c0_4 = arith.constant 0 : index
    %4 = vector.load %arg3[%c0_3, %c0_4] : memref<1x256xf32, #tpu.memory_space<vmem>>, vector<1x256xf32>
    %5 = vector.broadcast %4 : vector<1x256xf32> to vector<8x256xf32>
    %6 = arith.addf %3, %5 : vector<8x256xf32>
    %cst_5 = arith.constant 0.000000e+00 : f32
    %7 = vector.broadcast %cst_5 : f32 to vector<8x256xf32>
    %8 = arith.maximumf %6, %7 : vector<8x256xf32>
    %9 = arith.truncf %8 : vector<8x256xf32> to vector<8x256xbf16>
    %c0_6 = arith.constant 0 : index
    %c0_7 = arith.constant 0 : index
    %10 = vector.load %arg4[%c0_6, %c0_7] : memref<256x256xbf16, #tpu.memory_space<vmem>>, vector<256x256xbf16>
    %cst_8 = arith.constant dense<0.000000e+00> : vector<8x256xf32>
    %11 = tpu.matmul %9, %10, %cst_8 {dimension_numbers = #tpu.dot_dimension_numbers<[1], [0], [0], [1], [0, 0, 1, 1], [], []>} : vector<8x256xbf16>, vector<256x256xbf16>, vector<8x256xf32> -> vector<8x256xf32>
    %c0_9 = arith.constant 0 : index
    %c0_10 = arith.constant 0 : index
    %12 = vector.load %arg5[%c0_9, %c0_10] : memref<1x256xf32, #tpu.memory_space<vmem>>, vector<1x256xf32>
    %13 = vector.broadcast %12 : vector<1x256xf32> to vector<8x256xf32>
    %14 = arith.addf %11, %13 : vector<8x256xf32>
    %cst_11 = arith.constant 0.000000e+00 : f32
    %15 = vector.broadcast %cst_11 : f32 to vector<8x256xf32>
    %16 = arith.maximumf %14, %15 : vector<8x256xf32>
    %17 = arith.truncf %16 : vector<8x256xf32> to vector<8x256xbf16>
    %c0_12 = arith.constant 0 : index
    %c0_13 = arith.constant 0 : index
    %18 = vector.load %arg6[%c0_12, %c0_13] : memref<256x256xbf16, #tpu.memory_space<vmem>>, vector<256x256xbf16>
    %cst_14 = arith.constant dense<0.000000e+00> : vector<8x256xf32>
    %19 = tpu.matmul %17, %18, %cst_14 {dimension_numbers = #tpu.dot_dimension_numbers<[1], [0], [0], [1], [0, 0, 1, 1], [], []>} : vector<8x256xbf16>, vector<256x256xbf16>, vector<8x256xf32> -> vector<8x256xf32>
    %c0_15 = arith.constant 0 : index
    %c0_16 = arith.constant 0 : index
    %20 = vector.load %arg7[%c0_15, %c0_16] : memref<1x256xf32, #tpu.memory_space<vmem>>, vector<1x256xf32>
    %21 = vector.broadcast %20 : vector<1x256xf32> to vector<8x256xf32>
    %22 = arith.addf %19, %21 : vector<8x256xf32>
    %cst_17 = arith.constant 0.000000e+00 : f32
    %23 = vector.broadcast %cst_17 : f32 to vector<8x256xf32>
    %24 = arith.maximumf %22, %23 : vector<8x256xf32>
    %25 = arith.truncf %24 : vector<8x256xf32> to vector<8x256xbf16>
    %c0_18 = arith.constant 0 : index
    %c0_19 = arith.constant 0 : index
    %26 = vector.load %arg8[%c0_18, %c0_19] : memref<256x4xbf16, #tpu.memory_space<vmem>>, vector<256x4xbf16>
    %cst_20 = arith.constant dense<0.000000e+00> : vector<8x4xf32>
    %27 = tpu.matmul %25, %26, %cst_20 {dimension_numbers = #tpu.dot_dimension_numbers<[1], [0], [0], [1], [0, 0, 1, 1], [], []>} : vector<8x256xbf16>, vector<256x4xbf16>, vector<8x4xf32> -> vector<8x4xf32>
    %c0_21 = arith.constant 0 : index
    %c0_22 = arith.constant 0 : index
    %28 = vector.load %arg9[%c0_21, %c0_22] : memref<1x4xf32, #tpu.memory_space<vmem>>, vector<1x4xf32>
    %29 = vector.broadcast %28 : vector<1x4xf32> to vector<8x4xf32>
    %30 = arith.addf %27, %29 : vector<8x4xf32>
    %31 = math.tanh %30 : vector<8x4xf32>
    %cst_23 = arith.constant 1.000000e+00 : f32
    %32 = vector.broadcast %cst_23 : f32 to vector<8x4xf32>
    %33 = arith.mulf %32, %31 : vector<8x4xf32>
    %c0_24 = arith.constant 0 : index
    %c0_25 = arith.constant 0 : index
    %34 = vector.load %arg10[%c0_24, %c0_25] : memref<8x4xf32, #tpu.memory_space<vmem>>, vector<8x4xf32>
    tpu.vector_store %arg10[%c0_24, %c0_25], %33 {strides = array<i32>} : memref<8x4xf32, #tpu.memory_space<vmem>>, vector<8x4xf32>,
    return
  }
  func.func @transform_0(%arg0: i32) -> (i32, i32) {
    %c0_i32 = arith.constant 0 : i32
    %c0_i32_0 = arith.constant 0 : i32
    return %arg0, %c0_i32 : i32, i32
  }
  func.func @transform_1(%arg0: i32) -> (i32, i32) {
    %c0_i32 = arith.constant 0 : i32
    %c0_i32_0 = arith.constant 0 : i32
    %c0_i32_1 = arith.constant 0 : i32
    return %c0_i32, %c0_i32_0 : i32, i32
  }
  func.func @transform_2(%arg0: i32) -> (i32, i32) {
    %c0_i32 = arith.constant 0 : i32
    %c0_i32_0 = arith.constant 0 : i32
    %c0_i32_1 = arith.constant 0 : i32
    return %c0_i32, %c0_i32_0 : i32, i32
  }
  func.func @transform_3(%arg0: i32) -> (i32, i32) {
    %c0_i32 = arith.constant 0 : i32
    %c0_i32_0 = arith.constant 0 : i32
    %c0_i32_1 = arith.constant 0 : i32
    return %c0_i32, %c0_i32_0 : i32, i32
  }
  func.func @transform_4(%arg0: i32) -> (i32, i32) {
    %c0_i32 = arith.constant 0 : i32
    %c0_i32_0 = arith.constant 0 : i32
    %c0_i32_1 = arith.constant 0 : i32
    return %c0_i32, %c0_i32_0 : i32, i32
  }
  func.func @transform_5(%arg0: i32) -> (i32, i32) {
    %c0_i32 = arith.constant 0 : i32
    %c0_i32_0 = arith.constant 0 : i32
    %c0_i32_1 = arith.constant 0 : i32
    return %c0_i32, %c0_i32_0 : i32, i32
  }
  func.func @transform_6(%arg0: i32) -> (i32, i32) {
    %c0_i32 = arith.constant 0 : i32
    %c0_i32_0 = arith.constant 0 : i32
    %c0_i32_1 = arith.constant 0 : i32
    return %c0_i32, %c0_i32_0 : i32, i32
  }
  func.func @transform_7(%arg0: i32) -> (i32, i32) {
    %c0_i32 = arith.constant 0 : i32
    %c0_i32_0 = arith.constant 0 : i32
    %c0_i32_1 = arith.constant 0 : i32
    return %c0_i32, %c0_i32_0 : i32, i32
  }
  func.func @transform_8(%arg0: i32) -> (i32, i32) {
    %c0_i32 = arith.constant 0 : i32
    %c0_i32_0 = arith.constant 0 : i32
    %c0_i32_1 = arith.constant 0 : i32
    return %c0_i32, %c0_i32_0 : i32, i32
  }
  func.func @transform_9(%arg0: i32) -> (i32, i32) {
    %c0_i32 = arith.constant 0 : i32
    %c0_i32_0 = arith.constant 0 : i32
    return %arg0, %c0_i32 : i32, i32
  }
}

</mosaic_0001>

<bundles_post_ra>
// kernel: actor_forward.1
= control target key start
LH: loop header
LB: loop body
LE: loop exit
PB: predicated region body
PF: predicated region fallthrough
CT: control target
= control target key end

     0   :  { %14 = vsyncpa [#allocation3], 0  ;;  %s1243_s0 = inlined_call_operand.vmem [shape: f32[8,13], index: 0, kind: input, shape index: {}]   ;;  %s1244_s1 = inlined_call_operand.vmem [shape: bf16[13,256], index: 1, kind: input, shape index: {}]   ;;  %s1245_s2 = inlined_call_operand.vmem [shape: f32[1,256], index: 2, kind: input, shape index: {}]   ;;  %s1246_s3 = inlined_call_operand.hbm [shape: bf16[256,256], index: 3, kind: input, shape index: {}]   ;;  %s1247_s4 = inlined_call_operand.vmem [shape: f32[1,256], index: 4, kind: input, shape index: {}]   ;;  %s1248_s5 = inlined_call_operand.hbm [shape: bf16[256,256], index: 5, kind: input, shape index: {}]   ;;  %s1249_s6 = inlined_call_operand.vmem [shape: f32[1,256], index: 6, kind: input, shape index: {}]   ;;  %s1250_s7 = inlined_call_operand.vmem [shape: bf16[256,4], index: 7, kind: input, shape index: {}]   ;;  %s1251_s8 = inlined_call_operand.vmem [shape: f32[1,4], index: 8, kind: input, shape index: {}]   ;;  %s1252_s9 = inlined_call_operand.vmem [shape: f32[8,4], index: 9, kind: output, shape index: {}]  }
   0x1   :  { %15 = vsyncpa [#allocation5], 0  ;;  %s1099_s30 = smov [#allocation2]  }
   0x2   :  { %s27_s10 = sshll.u32 %s1099_s30, 4  ;;  %s28_s10 = int_to_ptr.vmem [resolvable:$true] %s27_s10 }
   0x3   :  { %s1063_s11 = scalar_lea.vmem %s28_s10, 4096  ;;  %p1068_p1 = scmp.lt.s32.totalorder %s28_s10, %s28_s10 }
   0x4   :  { %p1064_p0 = scmp.ne.s32.totalorder %s28_s10, %s1063_s11  ;;  %p1069_p2 = scmp.lt.s32.totalorder %s1063_s11, %s1063_s11 }
   0x6   :  { %p1070_p3 = por %p1069_p2, %p1068_p1 }
   0x8   :  { %p1071_p4 = pnand %p1070_p3, %p1064_p0 }
   0xa   :  { %1074 = shalt.err (!%p1071_p4)
}
   0xb   :  { %s1100_s12 = smov 128   ;;  %s1101_s13 = smov 8  }
   0xc   :  { %33 = dma.hbm_to_vmem [thread:$0]  %s1246_s3, 4096, %s28_s10, [#allocation3], %s1100_s12, %s1100_s12, %s1101_s13  }
   0xd   :  { %s1102_s16 = smov [#allocation4]  }
   0xe   :  { %s41_s17 = sshll.u32 %s1102_s16, 4  ;;  %s42_s17 = int_to_ptr.vmem [resolvable:$true] %s41_s17 }
   0xf   :  { %s1083_s18 = scalar_lea.vmem %s42_s17, 4096  ;;  %p1088_p6 = scmp.lt.s32.totalorder %s42_s17, %s42_s17 }
  0x10   :  { %p1084_p5 = scmp.ne.s32.totalorder %s42_s17, %s1083_s18  ;;  %p1089_p7 = scmp.lt.s32.totalorder %s1083_s18, %s1083_s18 }
  0x12   :  { %p1090_p8 = por %p1089_p7, %p1088_p6 }
  0x14   :  { %p1091_p9 = pnand %p1090_p8, %p1084_p5 }
  0x16   :  { %1094 = shalt.err (!%p1091_p9)
}
  0x17   :  { %47 = dma.hbm_to_vmem [thread:$0]  %s1248_s5, 4096, %s42_s17, [#allocation5], %s1100_s12, %s1100_s12, %s1101_s13  }
  0x18   :  { %1095 = dma.done.wait [#allocation3], 4096  }
  0x19   :  { %1096 = vsyncadd [#allocation3], 4294963200 }
  0x1a   :  { %1097 = dma.done.wait [#allocation5], 4096  }
  0x1b   :  { %1098 = vsyncadd [#allocation5], 4294963200  ;;  %vm89_vm0 = vcmask 1045504   ;;  %v1103_v0 = vmov 0   ;;  %vm90_vm1 = vcmask 1046528   ;;  %v1104_v1 = vmov 65535  }
  0x1c   :  { %131 = vmatprep.mubr.bf16.mxu0 %v1103_v0  ;;  %v91_v2 = vsel %vm89_vm0, 4294967295, %v1104_v1  ;;  %v938_v4 = vld [vmem:[%s1244_s1 + $0x4] ss:$8 sps:$4 sm:$0x7f]   ;;  %v941_v8 = vld [vmem:[#allocation2 + $0x74] ss:$8 sps:$4 sm:$0xff]  }
  0x1d   :  { %v92_v3 = vsel %vm90_vm1, %v91_v2, 0  ;;  %v940_v5 = vld [vmem:[%s1244_s1] ss:$8 sps:$4 sm:$0x7f]   ;;  %v943_v9 = vld [vmem:[#allocation2 + $0x70] ss:$8 sps:$4 sm:$0xff]   ;;  %348 = vmatprep.subr.bf16.mxu1 %v941_v8 }
  0x1e   :  { %v61_v6 = vld [vmem:[%s1243_s0] sm:$0xff]  ;;  %v97_v7 = vand.u32 %v938_v4, %v92_v3  ;;  %v94_v10 = vand.u32 %v940_v5, %v92_v3  ;;  %vm85_vm2 = vcmask 105472   ;;  %349 = vmatpush1.bf16.msra.mxu1 %v943_v9  ;;  %v947_v14 = vld [vmem:[#allocation2 + $0x54] ss:$8 sps:$4 sm:$0xff]   ;;  %v949_v15 = vld [vmem:[#allocation2 + $0x50] ss:$8 sps:$4 sm:$0xff]  }
  0x1f   :  { %v944_v11 = vld [vmem:[#allocation2 + $0x64] ss:$8 sps:$4 sm:$0xff]   ;;  %v62_v12 = vpack.c.bf16 %v61_v6, %v61_v6  ;;  %v946_v13 = vld [vmem:[#allocation2 + $0x60] ss:$8 sps:$4 sm:$0xff]   ;;  %v953_v18 = vld [vmem:[#allocation2 + $0x34] ss:$8 sps:$4 sm:$0xff]   ;;  %v67_v6 = vlaneseq }
  0x20   :  { %113 = vmatprep.subr.bf16.mxu0 %v97_v7  ;;  %350 = vmatprep.subr.bf16.mxu1 %v944_v11  ;;  %v950_v16 = vld [vmem:[#allocation2 + $0x44] ss:$8 sps:$4 sm:$0xff]   ;;  %v952_v17 = vld [vmem:[#allocation2 + $0x40] ss:$8 sps:$4 sm:$0xff]   ;;  %v955_v19 = vld [vmem:[#allocation2 + $0x30] ss:$8 sps:$4 sm:$0xff]  }
  0x21   :  { %114 = vmatpush1.bf16.msra.mxu0 %v94_v10  ;;  %v956_v20 = vld [vmem:[#allocation2 + $0x24] ss:$8 sps:$4 sm:$0xff]   ;;  %v958_v21 = vld [vmem:[#allocation2 + $0x20] ss:$8 sps:$4 sm:$0xff]   ;;  %v959_v22 = vld [vmem:[#allocation2 + $0x14] ss:$8 sps:$4 sm:$0xff]  }
  0x22   :  { %351 = vmatpush1.bf16.msra.mxu1 %v946_v13  ;;  %v961_v23 = vld [vmem:[#allocation2 + $0x10] ss:$8 sps:$4 sm:$0xff]   ;;  %v962_v24 = vld [vmem:[#allocation2 + $0x4] ss:$8 sps:$4 sm:$0xff]   ;;  %v964_v25 = vld [vmem:[#allocation2] ss:$8 sps:$4 sm:$0xff]  }
  0x23   :  { %352 = vmatprep.subr.bf16.mxu1 %v947_v14  ;;  %v965_v26 = vld [vmem:[#allocation2 + $0xf4] ss:$8 sps:$4 sm:$0xff]   ;;  %v967_v27 = vld [vmem:[#allocation2 + $0xf0] ss:$8 sps:$4 sm:$0xff]   ;;  %v968_v28 = vld [vmem:[#allocation2 + $0xe4] ss:$8 sps:$4 sm:$0xff]  }
  0x24   :  { %828 = vmatmul.mubr.msk.bf16.vlgmr.msra.gmra.mxu0 %vm85_vm2, %v62_v12  ;;  %v970_v29 = vld [vmem:[#allocation2 + $0xe0] ss:$8 sps:$4 sm:$0xff]   ;;  %v971_v30 = vld [vmem:[#allocation2 + $0xd4] ss:$8 sps:$4 sm:$0xff]   ;;  %v973_v31 = vld [vmem:[#allocation2 + $0xd0] ss:$8 sps:$4 sm:$0xff]  }
  0x25   :  { %v974_v32 = vld [vmem:[#allocation2 + $0xc4] ss:$8 sps:$4 sm:$0xff]   ;;  %v976_v33 = vld [vmem:[#allocation2 + $0xc0] ss:$8 sps:$4 sm:$0xff]   ;;  %v977_v34 = vld [vmem:[#allocation2 + $0xb4] ss:$8 sps:$4 sm:$0xff]  }
  0x26   :  { %353 = vmatpush1.bf16.msra.mxu1 %v949_v15  ;;  %v979_v35 = vld [vmem:[#allocation2 + $0xb0] ss:$8 sps:$4 sm:$0xff]   ;;  %v980_v36 = vld [vmem:[#allocation2 + $0xa4] ss:$8 sps:$4 sm:$0xff]   ;;  %v982_v37 = vld [vmem:[#allocation2 + $0xa0] ss:$8 sps:$4 sm:$0xff]  }
  0x27   :  { %354 = vmatprep.subr.bf16.mxu1 %v950_v16  ;;  %v983_v38 = vld [vmem:[#allocation2 + $0x94] ss:$8 sps:$4 sm:$0xff]   ;;  %v985_v39 = vld [vmem:[#allocation2 + $0x90] ss:$8 sps:$4 sm:$0xff]   ;;  %v986_v40 = vld [vmem:[#allocation2 + $0x84] ss:$8 sps:$4 sm:$0xff]  }
  0x28   :  { %v988_v41 = vld [vmem:[#allocation2 + $0x80] ss:$8 sps:$4 sm:$0xff]   ;;  %v989_v42 = vld [vmem:[#allocation4 + $0x70] ss:$8 sps:$4 sm:$0xff]   ;;  %v991_v43 = vld [vmem:[#allocation4 + $0x74] ss:$8 sps:$4 sm:$0xff]  }
  0x29   :  { %v994_v44 = vld [vmem:[#allocation4 + $0x64] ss:$8 sps:$4 sm:$0xff]   ;;  %597 = vmatprep.subr.bf16.mxu0 %v991_v43  ;;  %v992_v45 = vld [vmem:[#allocation4 + $0x60] ss:$8 sps:$4 sm:$0xff]   ;;  %v997_v46 = vld [vmem:[#allocation4 + $0x54] ss:$8 sps:$4 sm:$0xff]  }
  0x2a   :  { %355 = vmatpush1.bf16.msra.mxu1 %v952_v17  ;;  %598 = vmatpush1.bf16.msra.mxu0 %v989_v42  ;;  %v995_v47 = vld [vmem:[#allocation4 + $0x50] ss:$8 sps:$4 sm:$0xff]   ;;  %v1000_v48 = vld [vmem:[#allocation4 + $0x44] ss:$8 sps:$4 sm:$0xff]   ;;  %v998_v49 = vld [vmem:[#allocation4 + $0x40] ss:$8 sps:$4 sm:$0xff]  }
  0x2b   :  { %356 = vmatprep.subr.bf16.mxu1 %v953_v18  ;;  %599 = vmatprep.subr.bf16.mxu0 %v994_v44  ;;  %v1003_v50 = vld [vmem:[#allocation4 + $0x34] ss:$8 sps:$4 sm:$0xff]   ;;  %v1001_v51 = vld [vmem:[#allocation4 + $0x30] ss:$8 sps:$4 sm:$0xff]   ;;  %v1006_v52 = vld [vmem:[#allocation4 + $0x24] ss:$8 sps:$4 sm:$0xff]  }
  0x2c   :  { %v1004_v53 = vld [vmem:[#allocation4 + $0x20] ss:$8 sps:$4 sm:$0xff]   ;;  %v1009_v54 = vld [vmem:[#allocation4 + $0x14] ss:$8 sps:$4 sm:$0xff]   ;;  %v1007_v55 = vld [vmem:[#allocation4 + $0x10] ss:$8 sps:$4 sm:$0xff]  }
  0x2d   :  { %v1012_v56 = vld [vmem:[#allocation4 + $0x4] ss:$8 sps:$4 sm:$0xff]   ;;  %v1010_v57 = vld [vmem:[#allocation4] ss:$8 sps:$4 sm:$0xff]   ;;  %v1015_v58 = vld [vmem:[#allocation4 + $0xf4] ss:$8 sps:$4 sm:$0xff]  }
  0x2e   :  { %357 = vmatpush1.bf16.msra.mxu1 %v955_v19  ;;  %600 = vmatpush1.bf16.msra.mxu0 %v992_v45  ;;  %v1013_v59 = vld [vmem:[#allocation4 + $0xf0] ss:$8 sps:$4 sm:$0xff]   ;;  %v1018_v60 = vld [vmem:[#allocation4 + $0xe4] ss:$8 sps:$4 sm:$0xff]   ;;  %v1016_v61 = vld [vmem:[#allocation4 + $0xe0] ss:$8 sps:$4 sm:$0xff]  }
  0x2f   :  { %358 = vmatprep.subr.bf16.mxu1 %v956_v20  ;;  %601 = vmatprep.subr.bf16.mxu0 %v997_v46  ;;  %v1021_v62 = vld [vmem:[#allocation4 + $0xd4] ss:$8 sps:$4 sm:$0xff]   ;;  %v1019_v63 = vld [vmem:[#allocation4 + $0xd0] ss:$8 sps:$4 sm:$0xff]   ;;  %v1024_v0 = vld [vmem:[#allocation4 + $0xc4] ss:$8 sps:$4 sm:$0xff]  }
  0x30   :  { %v1022_v1 = vld [vmem:[#allocation4 + $0xc0] ss:$8 sps:$4 sm:$0xff]   ;;  %v1027_v2 = vld [vmem:[#allocation4 + $0xb4] ss:$8 sps:$4 sm:$0xff]   ;;  %v1025_v3 = vld [vmem:[#allocation4 + $0xb0] ss:$8 sps:$4 sm:$0xff]  }
  0x31   :  { %v1030_v4 = vld [vmem:[#allocation4 + $0xa4] ss:$8 sps:$4 sm:$0xff]   ;;  %v1028_v5 = vld [vmem:[#allocation4 + $0xa0] ss:$8 sps:$4 sm:$0xff]   ;;  %v68_v7 = vshrl.u32 %v67_v6, 7  ;;  %vm818_vm3 = vcmask 31744  }
  0x32   :  { %359 = vmatpush1.bf16.msra.mxu1 %v958_v21  ;;  %602 = vmatpush1.bf16.msra.mxu0 %v995_v47  ;;  %v65_v9 = vld [vmem:[%s1245_s2] sm:$0x3] }
  0x33   :  { %360 = vmatprep.subr.bf16.mxu1 %v959_v22  ;;  %603 = vmatprep.subr.bf16.mxu0 %v1000_v48  ;;  %v1170_v8 = vsub.s32 0, %v68_v7  ;;  %v1175_v10 = vsub.s32 1, %v68_v7  ;;  %v893_v6 = vld [vmem:[%s1251_s8] ss:$0 sm:$0xff] }
  0x35   :  { %v70_v11 = vrot.slane %v65_v9, %v1170_v8  ;;  %v74_v12 = vrot.slane %v65_v9, %v1175_v10 }
  0x36   :  { %361 = vmatpush1.bf16.msra.mxu1 %v961_v23  ;;  %604 = vmatpush1.bf16.msra.mxu0 %v998_v49  ;;  %v1033_v23 = vld [vmem:[#allocation4 + $0x94] ss:$8 sps:$4 sm:$0xff]  }
  0x37   :  { %362 = vmatprep.subr.bf16.mxu1 %v962_v24  ;;  %605 = vmatprep.subr.bf16.mxu0 %v1003_v50  ;;  %v1031_v24 = vld [vmem:[#allocation4 + $0x90] ss:$8 sps:$4 sm:$0xff]  }
  0x3a   :  { %363 = vmatpush1.bf16.msra.mxu1 %v964_v25  ;;  %606 = vmatpush1.bf16.msra.mxu0 %v1001_v51  ;;  %v1036_v25 = vld [vmem:[#allocation4 + $0x84] ss:$8 sps:$4 sm:$0xff]  }
  0x3b   :  { %364 = vmatprep.subr.bf16.mxu1 %v965_v26  ;;  %607 = vmatprep.subr.bf16.mxu0 %v1006_v52  ;;  %v1034_v26 = vld [vmem:[#allocation4 + $0x80] ss:$8 sps:$4 sm:$0xff]  }
  0x3c   :  { %v1049_v52 = vld [vmem:[%s1250_s7 + $0x48] sm:$0xff]  }
  0x3e   :  { %365 = vmatpush2.bf16.msra.mxu1 %v967_v27  ;;  %608 = vmatpush1.bf16.msra.mxu0 %v1004_v53  ;;  %v1037_v27 = vld [vmem:[%s1250_s7 + $0x78] sm:$0xff]   ;;  %v1050_v53 = vld [vmem:[%s1250_s7 + $0x8] sm:$0xff]  }
  0x3f   :  { %366 = vmatprep.subr.bf16.mxu1 %v968_v28  ;;  %609 = vmatprep.subr.bf16.mxu0 %v1009_v54  ;;  %v1038_v28 = vld [vmem:[%s1250_s7 + $0x38] sm:$0xff]   ;;  %v1051_v54 = vld [vmem:[%s1250_s7 + $0x40] sm:$0xff]  }
  0x42   :  { %367 = vmatpush2.bf16.msra.mxu1 %v970_v29  ;;  %610 = vmatpush1.bf16.msra.mxu0 %v1007_v55  ;;  %v1039_v29 = vld [vmem:[%s1250_s7 + $0x70] sm:$0xff]   ;;  %v1052_v55 = vld [vmem:[%s1250_s7] sm:$0xff]  }
  0x43   :  { %368 = vmatprep.subr.bf16.mxu1 %v971_v30  ;;  %611 = vmatprep.subr.bf16.mxu0 %v1012_v56  ;;  %v1040_v30 = vld [vmem:[%s1250_s7 + $0x30] sm:$0xff]   ;;  %v425_v56 = vld [vmem:[%s1249_s6] sm:$0x3] }
  0x46   :  { %369 = vmatpush2.bf16.msra.mxu1 %v973_v31  ;;  %612 = vmatpush1.bf16.msra.mxu0 %v1010_v57  ;;  %v1041_v31 = vld [vmem:[%s1250_s7 + $0x68] sm:$0xff]   ;;  %v430_v57 = vrot.slane %v425_v56, %v1170_v8 }
  0x47   :  { %370 = vmatprep.subr.bf16.mxu1 %v974_v32  ;;  %613 = vmatprep.subr.bf16.mxu0 %v1015_v58  ;;  %v1042_v32 = vld [vmem:[%s1250_s7 + $0x28] sm:$0xff]   ;;  %v434_v58 = vrot.slane %v425_v56, %v1175_v10 }
  0x4a   :  { %371 = vmatpush2.bf16.msra.mxu1 %v976_v33  ;;  %614 = vmatpush2.bf16.msra.mxu0 %v1013_v59  ;;  %v1043_v33 = vld [vmem:[%s1250_s7 + $0x60] sm:$0xff]  }
  0x4b   :  { %372 = vmatprep.subr.bf16.mxu1 %v977_v34  ;;  %615 = vmatprep.subr.bf16.mxu0 %v1018_v60  ;;  %v1044_v34 = vld [vmem:[%s1250_s7 + $0x20] sm:$0xff]  }
  0x4e   :  { %373 = vmatpush2.bf16.msra.mxu1 %v979_v35  ;;  %616 = vmatpush2.bf16.msra.mxu0 %v1016_v61  ;;  %v1045_v35 = vld [vmem:[%s1250_s7 + $0x58] sm:$0xff]  }
  0x4f   :  { %374 = vmatprep.subr.bf16.mxu1 %v980_v36  ;;  %617 = vmatprep.subr.bf16.mxu0 %v1021_v62  ;;  %v1046_v36 = vld [vmem:[%s1250_s7 + $0x18] sm:$0xff]  }
  0x52   :  { %375 = vmatpush2.bf16.msra.mxu1 %v982_v37  ;;  %618 = vmatpush2.bf16.msra.mxu0 %v1019_v63  ;;  %v1047_v37 = vld [vmem:[%s1250_s7 + $0x50] sm:$0xff]  }
  0x53   :  { %376 = vmatprep.subr.bf16.mxu1 %v983_v38  ;;  %619 = vmatprep.subr.bf16.mxu0 %v1024_v0  ;;  %v1048_v38 = vld [vmem:[%s1250_s7 + $0x10] sm:$0xff]  }
  0x56   :  { %377 = vmatpush2.bf16.msra.mxu1 %v985_v39  ;;  %620 = vmatpush2.bf16.msra.mxu0 %v1022_v1  ;;  %v176_v39 = vld [vmem:[%s1247_s4] sm:$0x3] }
  0x57   :  { %378 = vmatprep.subr.bf16.mxu1 %v986_v40  ;;  %621 = vmatprep.subr.bf16.mxu0 %v1027_v2  ;;  %v181_v40 = vrot.slane %v176_v39, %v1170_v8 }
  0x5a   :  { %379 = vmatpush2.bf16.msra.mxu1 %v988_v41  ;;  %622 = vmatpush2.bf16.msra.mxu0 %v1025_v3  ;;  %v185_v41 = vrot.slane %v176_v39, %v1175_v10 }
  0x5b   :  { %623 = vmatprep.subr.bf16.mxu0 %v1030_v4  ;;  %910 = vmatprep.subr.bf16.mxu1 %v1037_v27 }
  0x5e   :  { %624 = vmatpush2.bf16.msra.mxu0 %v1028_v5 }
  0x5f   :  { %625 = vmatprep.subr.bf16.mxu0 %v1033_v23 }
  0x62   :  { %626 = vmatpush2.bf16.msra.mxu0 %v1031_v24 }
  0x63   :  { %627 = vmatprep.subr.bf16.mxu0 %v1036_v25 }
  0x66   :  { %628 = vmatpush2.bf16.msra.mxu0 %v1034_v26 }
  0xe4   :  { %v133_v13 = vpop.f32.mrf.mxu0 }
  0xe5   :  { %v134_v14 = vadd.f32 %v133_v13, %v70_v11 }
  0xe6   :  { %v135_v15 = vpop.f32.mrf.mxu0 }
  0xe7   :  { %v136_v16 = vadd.f32 %v135_v15, %v74_v12  ;;  %v140_v17 = vmax.f32 %v134_v14, 0.0 }
  0xe8   :  { %v137_v18 = vpop.f32.mrf.mxu0 }
  0xe9   :  { %v141_v19 = vmax.f32 %v136_v16, 0.0  ;;  %v142_v22 = vpack.c.bf16 %v140_v17, %v140_v17 }
  0xea   :  { %v138_v20 = vpop.f32.mrf.mxu0 }
  0xeb   :  { %v143_v21 = vpack.c.bf16 %v141_v19, %v141_v19 }
  0xed   :  { %380 = vmatprep.mubr.bf16.mxu1 %v143_v21 }
  0xee   :  { %381 = vmatmul.mubr.bf16.vlgmr.msra.gmra.mxu1 %v142_v22 }
  0xef   :  { %911 = vmatpush3.bf16.msra.mxu1 %v1038_v28 }
  0xf0   :  { %912 = vmatprep.subr.bf16.mxu1 %v1039_v29 }
  0xf3   :  { %913 = vmatpush3.bf16.msra.mxu1 %v1040_v30 }
  0xf4   :  { %914 = vmatprep.subr.bf16.mxu1 %v1041_v31 }
  0xf7   :  { %915 = vmatpush3.bf16.msra.mxu1 %v1042_v32 }
  0xf8   :  { %916 = vmatprep.subr.bf16.mxu1 %v1043_v33 }
  0xfb   :  { %917 = vmatpush3.bf16.msra.mxu1 %v1044_v34 }
  0xfc   :  { %918 = vmatprep.subr.bf16.mxu1 %v1045_v35 }
  0xff   :  { %919 = vmatpush3.bf16.msra.mxu1 %v1046_v36 }
 0x100   :  { %920 = vmatprep.subr.bf16.mxu1 %v1047_v37 }
 0x103   :  { %921 = vmatpush3.bf16.msra.mxu1 %v1048_v38 }
 0x104   :  { %922 = vmatprep.subr.bf16.mxu1 %v1049_v52 }
 0x107   :  { %923 = vmatpush3.bf16.msra.mxu1 %v1050_v53 }
 0x108   :  { %924 = vmatprep.subr.bf16.mxu1 %v1051_v54 }
 0x10b   :  { %925 = vmatpush3.bf16.msra.mxu1 %v1052_v55 }
 0x1ae   :  { %v382_v42 = vpop.f32.mrf.mxu1 }
 0x1af   :  { %v383_v43 = vadd.f32 %v382_v42, %v181_v40 }
 0x1b0   :  { %v384_v44 = vpop.f32.mrf.mxu1 }
 0x1b1   :  { %v385_v45 = vadd.f32 %v384_v44, %v185_v41  ;;  %v389_v46 = vmax.f32 %v383_v43, 0.0 }
 0x1b2   :  { %v386_v47 = vpop.f32.mrf.mxu1 }
 0x1b3   :  { %v390_v48 = vmax.f32 %v385_v45, 0.0  ;;  %v391_v51 = vpack.c.bf16 %v389_v46, %v389_v46 }
 0x1b4   :  { %v387_v49 = vpop.f32.mrf.mxu1 }
 0x1b5   :  { %v392_v50 = vpack.c.bf16 %v390_v48, %v390_v48 }
 0x1b7   :  { %629 = vmatprep.mubr.bf16.mxu0 %v392_v50 }
 0x1b8   :  { %630 = vmatmul.mubr.bf16.vlgmr.msra.gmra.mxu0 %v391_v51 }
 0x278   :  { %v631_v59 = vpop.f32.mrf.mxu0 }
 0x279   :  { %v632_v60 = vadd.f32 %v631_v59, %v430_v57 }
 0x27a   :  { %v633_v61 = vpop.f32.mrf.mxu0 }
 0x27b   :  { %v634_v62 = vadd.f32 %v633_v61, %v434_v58  ;;  %v638_v63 = vmax.f32 %v632_v60, 0.0 }
 0x27c   :  { %v635_v0 = vpop.f32.mrf.mxu0 }
 0x27d   :  { %v639_v1 = vmax.f32 %v634_v62, 0.0  ;;  %v640_v4 = vpack.c.bf16 %v638_v63, %v638_v63 }
 0x27e   :  { %v636_v2 = vpop.f32.mrf.mxu0 }
 0x27f   :  { %v641_v3 = vpack.c.bf16 %v639_v1, %v639_v1 }
 0x281   :  { %809 = vmatprep.mubr.bf16.mxu1 %v641_v3 }
 0x282   :  { %810 = vmatmul.mubr.bf16.vlgmr.msra.gmra.mxu1 %v640_v4 }
 0x342   :  { %v926_v5 = vpop.f32.mrf.mxu1 }
 0x344   :  { %v927_v7 = vpop.f32.mrf.mxu1 }
 0x345   :  { %v928_v8 = vadd.f32 %v927_v7, %v926_v5 }
 0x346   :  { %v929_v9 = vpop.f32.mrf.mxu1 }
 0x347   :  { %v812_v10 = vadd.f32 %v928_v8, %v893_v6 }
 0x348   :  { %v930_v11 = vpop.f32.mrf.mxu1 }
 0x349   :  { %1053 = vtanh.f32 %v812_v10 }
 0x356   :  { %v1054_v12 = vpop.eup %1053 }
 0x357   :  { %819 = vst.msk [vmem:[%s1252_s9] sm:$0xff] %vm818_vm3, %v1054_v12 }
 0x358   :  { %824 = vsyncpa [#allocation3], 1 }
 0x359   :  { %825 = vsyncpa [#allocation5], 1 }

</bundles_post_ra>
